<compile_context>
chip_gen: v6e
topology: v6e:2x2x1
jax: 0.10.0
libtpu: 0.0.40
codegen_flags: <defaults>
</compile_context>

<pallas_src>
import functools

import jax
import jax.numpy as jnp
from jax.experimental import pallas as pl
from jax.experimental.pallas import tpu as pltpu


def _round_up(x, m):
    return ((x + m - 1) // m) * m


# ----------------------------- Pallas kernels ------------------------------

def _encode_and_score_kernel(xp_ref, h_ref, t_ref, r_ref, a_ref,
                             w1_ref, b1_ref, w2_ref, b2_ref,
                             z_ref, s_ref):
    """Fused per-tile: z = MLP(h+t+r+a); scores[b, e] = xp[b] . z[e].

    Elementwise math stays f32 (VPU/EUP); matmul operands are bf16 with f32
    accumulation so the MXU runs at full rate on v6e/v7x.  The freshly
    computed z tile is scored while still in VMEM (no HBM round-trip).
    """
    msg = h_ref[...] + t_ref[...] + r_ref[...] + a_ref[...]          # f32
    hid = jnp.tanh(
        jnp.dot(msg.astype(jnp.bfloat16), w1_ref[...],
                preferred_element_type=jnp.float32) + b1_ref[...])   # f32
    z = (jnp.dot(hid.astype(jnp.bfloat16), w2_ref[...],
                 preferred_element_type=jnp.float32) + b2_ref[...])  # f32
    z_ref[...] = z.astype(z_ref.dtype)
    s_ref[...] = jax.lax.dot_general(
        xp_ref[...], z,
        dimension_numbers=(((1,), (1,)), ((), ())),
        preferred_element_type=jnp.float32)


def _triplet_encoder_kernel(h_ref, t_ref, r_ref, a_ref,
                            w1_ref, b1_ref, w2_ref, b2_ref, z_ref):
    """z = tanh((x[src] + x[dst] + rel_emb + edge_attr) @ W1 + b1) @ W2 + b2."""
    msg = h_ref[...] + t_ref[...] + r_ref[...] + a_ref[...]          # f32
    hid = jnp.tanh(
        jnp.dot(msg.astype(jnp.bfloat16), w1_ref[...],
                preferred_element_type=jnp.float32) + b1_ref[...])   # f32
    z_ref[...] = (
        jnp.dot(hid.astype(jnp.bfloat16), w2_ref[...],
                preferred_element_type=jnp.float32)
        + b2_ref[...]).astype(z_ref.dtype)


def _lm_score_batched_kernel(xp_ref, cz_ref, s_ref):
    """scores[b, m] = xp[b] . cz[b, m]  -- per-claim candidate/negative scores."""
    # Tiny output ([B, k*(1+neg)]); VPU broadcast-multiply + lane reduce is
    # sufficient and lowers robustly for the batched mat-vec.
    s_ref[...] = jnp.sum(xp_ref[...][:, None, :] * cz_ref[...], axis=-1)


_VMEM = pl.BlockSpec(memory_space=pltpu.MemorySpace.VMEM)
_PARALLEL = pltpu.CompilerParams(dimension_semantics=("parallel",))


# ------------------------------ kernel wrappers ------------------------------

def encode_and_score_kg(xp, h, t, r, a, w1_bf16, b1, w2_bf16, b2,
                        *, tile_e=1024):
    """Fused full-KG triplet encode + claim-vs-all scoring, gridded over E."""
    e, d = h.shape
    hdim = w2_bf16.shape[1]
    b = xp.shape[0]

    tile_e = min(tile_e, _round_up(e, 8))
    e_pad = _round_up(e, tile_e)
    if e_pad != e:
        pad = [(0, e_pad - e), (0, 0)]
        h, t, r, a = (jnp.pad(v, pad) for v in (h, t, r, a))

    row_spec = pl.BlockSpec((tile_e, d), lambda i: (i, 0))

    def const_spec(shape):
        return pl.BlockSpec(shape, lambda i: (0, 0))

    z, scores = pl.pallas_call(
        _encode_and_score_kernel,
        out_shape=(jax.ShapeDtypeStruct((e_pad, hdim), jnp.float32),
                   jax.ShapeDtypeStruct((b, e_pad), jnp.float32)),
        grid=(e_pad // tile_e,),
        in_specs=[const_spec(xp.shape),
                  row_spec, row_spec, row_spec, row_spec,
                  const_spec(w1_bf16.shape), const_spec(b1.shape),
                  const_spec(w2_bf16.shape), const_spec(b2.shape)],
        out_specs=[pl.BlockSpec((tile_e, hdim), lambda i: (i, 0)),
                   pl.BlockSpec((b, tile_e), lambda i: (0, i))],
        compiler_params=_PARALLEL,
    )(xp, h, t, r, a, w1_bf16, b1, w2_bf16, b2)
    # Drop padded rows / columns before the candidate gather and top-k.
    return z[:e], scores[:, :e]


def triplet_encode(h, t, r, a, w1_bf16, b1, w2_bf16, b2, *, tile_e=1024):
    """Gridded over E row-tiles; weights resident (constant index_map)."""
    e, d = h.shape
    hdim = w2_bf16.shape[1]

    tile_e = min(tile_e, _round_up(e, 8))
    e_pad = _round_up(e, tile_e)
    if e_pad != e:
        pad = [(0, e_pad - e), (0, 0)]
        h, t, r, a = (jnp.pad(v, pad) for v in (h, t, r, a))

    row_spec = pl.BlockSpec((tile_e, d), lambda i: (i, 0))

    def const_spec(shape):
        return pl.BlockSpec(shape, lambda i: (0, 0))

    out = pl.pallas_call(
        _triplet_encoder_kernel,
        out_shape=jax.ShapeDtypeStruct((e_pad, hdim), jnp.float32),
        grid=(e_pad // tile_e,),
        in_specs=[row_spec, row_spec, row_spec, row_spec,
                  const_spec(w1_bf16.shape), const_spec(b1.shape),
                  const_spec(w2_bf16.shape), const_spec(b2.shape)],
        out_specs=pl.BlockSpec((tile_e, hdim), lambda i: (i, 0)),
        compiler_params=_PARALLEL,
    )(h, t, r, a, w1_bf16, b1, w2_bf16, b2)
    return out[:e]


def lm_score_batched(xp, cz):
    """Small fused scorer: cz is [B, M, H] (M = k + k*neg), whole-array VMEM."""
    b, m, _ = cz.shape
    return pl.pallas_call(
        _lm_score_batched_kernel,
        out_shape=jax.ShapeDtypeStruct((b, m), jnp.float32),
        in_specs=[_VMEM, _VMEM],
        out_specs=_VMEM,
    )(xp, cz)


# ------------------------------ model wrapper -------------------------------

def xavier_uniform(key, shape):
    fan_in, fan_out = shape[0], shape[1]
    limit = (6.0 / (fan_in + fan_out)) ** 0.5
    return jax.random.uniform(key, shape, jnp.float32, -limit, limit)


def init_sfavel_params(key, num_relations, feat_dim, hidden_dim, lm_dim):
    k1, k2, k3, k4 = jax.random.split(key, 4)
    return {
        "rel_emb": xavier_uniform(k1, (num_relations, feat_dim)),
        "w1": xavier_uniform(k2, (feat_dim, hidden_dim)),
        "b1": jnp.zeros((1, hidden_dim), jnp.float32),
        "w2": xavier_uniform(k3, (hidden_dim, hidden_dim)),
        "b2": jnp.zeros((1, hidden_dim), jnp.float32),
        "wp": xavier_uniform(k4, (lm_dim, hidden_dim)),
    }


@functools.partial(jax.jit, static_argnames=("k", "negative_samples", "neg_ratio"))
def sfavel_forward(params, kg, x_lm, neg_key, k=10, negative_samples=4,
                   neg_ratio=0.5):
    src, dst = kg["edge_index"][0], kg["edge_index"][1]
    feat_dim = kg["x"].shape[-1]

    w1_bf16 = params["w1"].astype(jnp.bfloat16)
    w2_bf16 = params["w2"].astype(jnp.bfloat16)

    # Hoisted claim projection: computed once, reused by all scoring kernels.
    xp = jnp.dot(x_lm, params["wp"],
                 preferred_element_type=jnp.float32)                    # [B, H]

    # knowledge_model(x, edge_index, edge_type, edge_attr) -> per-triplet z,
    # fused with _get_top_k_triplets' claim-vs-all-KG scoring.
    h = kg["x"][src]
    t = kg["x"][dst]
    r = params["rel_emb"][kg["edge_type"]]
    a = kg["edge_attr"]
    kg_triplets_z, scores = encode_and_score_kg(
        xp, h, t, r, a, w1_bf16, params["b1"], w2_bf16, params["b2"])   # [E,H], [B,E]

    _, top_idx = jax.lax.top_k(scores, k)                               # [B, k]

    candidates_z = kg_triplets_z[top_idx]                               # [B, k, H]
    candidates_lm_z = kg["triplet_embedding"][top_idx]                  # [B, k, LM]
    candidates_src = src[top_idx]
    candidates_dst = dst[top_idx]
    candidates_edge_type = kg["edge_type"][top_idx]
    candidates_edge_attr = kg["edge_attr"][top_idx]                     # [B, k, D]

    # negative_sample: perturb head or tail of each candidate triplet.
    bsz = x_lm.shape[0]
    k_nodes, k_mask = jax.random.split(neg_key)
    rand_nodes = jax.random.randint(
        k_nodes, (bsz, k, negative_samples), 0, kg["x"].shape[0])
    perturb_head = jax.random.uniform(
        k_mask, (bsz, k, negative_samples)) < neg_ratio
    neg_src = jnp.where(perturb_head, rand_nodes, candidates_src[..., None])
    neg_dst = jnp.where(perturb_head, candidates_dst[..., None], rand_nodes)
    neg_type = jnp.broadcast_to(candidates_edge_type[..., None],
                                (bsz, k, negative_samples))
    neg_attr = jnp.broadcast_to(candidates_edge_attr[..., None, :],
                                (bsz, k, negative_samples, feat_dim))

    nh = kg["x"][neg_src].reshape(-1, feat_dim)
    nt = kg["x"][neg_dst].reshape(-1, feat_dim)
    nr = params["rel_emb"][neg_type].reshape(-1, feat_dim)
    na = neg_attr.reshape(-1, feat_dim)
    negatives_z = triplet_encode(nh, nt, nr, na, w1_bf16, params["b1"],
                                 w2_bf16, params["b2"])
    negatives_z = negatives_z.reshape(bsz, k * negative_samples, -1)    # [B, k*neg, H]

    # Fused pos + neg scoring in a single pallas_call.
    all_z = jnp.concatenate([candidates_z, negatives_z], axis=1)        # [B, k+k*neg, H]
    all_scores = lm_score_batched(xp, all_z)                            # [B, k+k*neg]
    pos_scores = all_scores[:, :k]                                      # [B, k]
    neg_scores = all_scores[:, k:]                                      # [B, k*neg]

    return x_lm, pos_scores, neg_scores, candidates_z, candidates_lm_z, negatives_z


# ---------------------------------- main ------------------------------------

if __name__ == "__main__":
    B = 2            # claims in the batch
    LM_DIM = 128     # language-model embedding dim
    FEAT = 128       # node / relation / edge-attr feature dim
    HIDDEN = 128     # triplet embedding dim
    N_NODES = 32
    N_RELS = 8
    N_EDGES = 64
    K = 8
    NEG_SAMPLES = 4
    NEG_RATIO = 0.5

    root = jax.random.PRNGKey(0)
    kp, kx, kei, ket, kea, kte, klm, kneg = jax.random.split(root, 8)

    params = init_sfavel_params(kp, N_RELS, FEAT, HIDDEN, LM_DIM)

    kg = {
        "x": jax.random.normal(kx, (N_NODES, FEAT), jnp.float32),
        "edge_index": jax.random.randint(kei, (2, N_EDGES), 0, N_NODES),
        "edge_type": jax.random.randint(ket, (N_EDGES,), 0, N_RELS),
        "edge_attr": jax.random.normal(kea, (N_EDGES, FEAT), jnp.float32),
        "triplet_embedding": jax.random.normal(kte, (N_EDGES, LM_DIM), jnp.float32),
    }
    # batch of claims: torch.stack([claim['embedding'] for claim in batch])
    x_lm = jax.random.normal(klm, (B, LM_DIM), jnp.float32)

    outs = sfavel_forward(params, kg, x_lm, kneg, k=K,
                          negative_samples=NEG_SAMPLES, neg_ratio=NEG_RATIO)
    outs = jax.block_until_ready(outs)

    x_lm_o, pos_scores, neg_scores, cand_z, cand_lm_z, negs_z = outs
    assert x_lm_o.shape == (B, LM_DIM)
    assert pos_scores.shape == (B, K)
    assert neg_scores.shape == (B, K * NEG_SAMPLES)
    assert cand_z.shape == (B, K, HIDDEN)
    assert cand_lm_z.shape == (B, K, LM_DIM)
    assert negs_z.shape == (B, K * NEG_SAMPLES, HIDDEN)
    assert all(jnp.all(jnp.isfinite(o)) for o in
               (pos_scores, neg_scores, cand_z, cand_lm_z, negs_z))
    print("KERNEL_OK")
</pallas_src>

<mosaic_0001>
module attributes {stable_mosaic.version = 11 : i64} {
  func.func @_encode_and_score_kernel(%arg0: i32, %arg1: memref<2x128xf32, #tpu.memory_space<vmem>>, %arg2: memref<64x128xf32, #tpu.memory_space<vmem>>, %arg3: memref<64x128xf32, #tpu.memory_space<vmem>>, %arg4: memref<64x128xf32, #tpu.memory_space<vmem>>, %arg5: memref<64x128xf32, #tpu.memory_space<vmem>>, %arg6: memref<128x128xbf16, #tpu.memory_space<vmem>>, %arg7: memref<1x128xf32, #tpu.memory_space<vmem>>, %arg8: memref<128x128xbf16, #tpu.memory_space<vmem>>, %arg9: memref<1x128xf32, #tpu.memory_space<vmem>>, %arg10: memref<64x128xf32, #tpu.memory_space<vmem>>, %arg11: memref<2x64xf32, #tpu.memory_space<vmem>>) attributes {dimension_semantics = [#tpu.dimension_semantics<parallel>], iteration_bounds = array<i64: 1>, scalar_prefetch = 0 : i64, scratch_operands = 0 : i64, tpu.core_type = #tpu.core_type<tc>, window_params = [{pipeline_mode = #tpu.pipeline_mode<synchronous>, transform_indices = @transform_0, window_bounds = array<i64: 2, 128>}, {transform_indices = @transform_1, window_bounds = array<i64: 64, 128>}, {transform_indices = @transform_2, window_bounds = array<i64: 64, 128>}, {transform_indices = @transform_3, window_bounds = array<i64: 64, 128>}, {transform_indices = @transform_4, window_bounds = array<i64: 64, 128>}, {pipeline_mode = #tpu.pipeline_mode<synchronous>, transform_indices = @transform_5, window_bounds = array<i64: 128, 128>}, {pipeline_mode = #tpu.pipeline_mode<synchronous>, transform_indices = @transform_6, window_bounds = array<i64: 1, 128>}, {pipeline_mode = #tpu.pipeline_mode<synchronous>, transform_indices = @transform_7, window_bounds = array<i64: 128, 128>}, {pipeline_mode = #tpu.pipeline_mode<synchronous>, transform_indices = @transform_8, window_bounds = array<i64: 1, 128>}, {transform_indices = @transform_9, window_bounds = array<i64: 64, 128>}, {transform_indices = @transform_10, window_bounds = array<i64: 2, 64>}]} {
    %c0 = arith.constant 0 : index
    %c0_0 = arith.constant 0 : index
    %0 = vector.load %arg2[%c0, %c0_0] : memref<64x128xf32, #tpu.memory_space<vmem>>, vector<64x128xf32>
    %c0_1 = arith.constant 0 : index
    %c0_2 = arith.constant 0 : index
    %1 = vector.load %arg3[%c0_1, %c0_2] : memref<64x128xf32, #tpu.memory_space<vmem>>, vector<64x128xf32>
    %2 = arith.addf %0, %1 : vector<64x128xf32>
    %c0_3 = arith.constant 0 : index
    %c0_4 = arith.constant 0 : index
    %3 = vector.load %arg4[%c0_3, %c0_4] : memref<64x128xf32, #tpu.memory_space<vmem>>, vector<64x128xf32>
    %4 = arith.addf %2, %3 : vector<64x128xf32>
    %c0_5 = arith.constant 0 : index
    %c0_6 = arith.constant 0 : index
    %5 = vector.load %arg5[%c0_5, %c0_6] : memref<64x128xf32, #tpu.memory_space<vmem>>, vector<64x128xf32>
    %6 = arith.addf %4, %5 : vector<64x128xf32>
    %7 = arith.truncf %6 : vector<64x128xf32> to vector<64x128xbf16>
    %c0_7 = arith.constant 0 : index
    %c0_8 = arith.constant 0 : index
    %8 = vector.load %arg6[%c0_7, %c0_8] : memref<128x128xbf16, #tpu.memory_space<vmem>>, vector<128x128xbf16>
    %cst = arith.constant dense<0.000000e+00> : vector<64x128xf32>
    %9 = tpu.matmul %7, %8, %cst {dimension_numbers = #tpu.dot_dimension_numbers<[1], [0], [0], [1], [0, 0, 1, 1], [], []>} : vector<64x128xbf16>, vector<128x128xbf16>, vector<64x128xf32> -> vector<64x128xf32>
    %c0_9 = arith.constant 0 : index
    %c0_10 = arith.constant 0 : index
    %10 = vector.load %arg7[%c0_9, %c0_10] : memref<1x128xf32, #tpu.memory_space<vmem>>, vector<1x128xf32>
    %11 = vector.broadcast %10 : vector<1x128xf32> to vector<64x128xf32>
    %12 = arith.addf %9, %11 : vector<64x128xf32>
    %13 = math.tanh %12 : vector<64x128xf32>
    %14 = arith.truncf %13 : vector<64x128xf32> to vector<64x128xbf16>
    %c0_11 = arith.constant 0 : index
    %c0_12 = arith.constant 0 : index
    %15 = vector.load %arg8[%c0_11, %c0_12] : memref<128x128xbf16, #tpu.memory_space<vmem>>, vector<128x128xbf16>
    %cst_13 = arith.constant dense<0.000000e+00> : vector<64x128xf32>
    %16 = tpu.matmul %14, %15, %cst_13 {dimension_numbers = #tpu.dot_dimension_numbers<[1], [0], [0], [1], [0, 0, 1, 1], [], []>} : vector<64x128xbf16>, vector<128x128xbf16>, vector<64x128xf32> -> vector<64x128xf32>
    %c0_14 = arith.constant 0 : index
    %c0_15 = arith.constant 0 : index
    %17 = vector.load %arg9[%c0_14, %c0_15] : memref<1x128xf32, #tpu.memory_space<vmem>>, vector<1x128xf32>
    %18 = vector.broadcast %17 : vector<1x128xf32> to vector<64x128xf32>
    %19 = arith.addf %16, %18 : vector<64x128xf32>
    %c0_16 = arith.constant 0 : index
    %c0_17 = arith.constant 0 : index
    %20 = vector.load %arg10[%c0_16, %c0_17] : memref<64x128xf32, #tpu.memory_space<vmem>>, vector<64x128xf32>
    tpu.vector_store %arg10[%c0_16, %c0_17], %19 {strides = array<i32>} : memref<64x128xf32, #tpu.memory_space<vmem>>, vector<64x128xf32>,
    %c0_18 = arith.constant 0 : index
    %c0_19 = arith.constant 0 : index
    %21 = vector.load %arg1[%c0_18, %c0_19] : memref<2x128xf32, #tpu.memory_space<vmem>>, vector<2x128xf32>
    %cst_20 = arith.constant dense<0.000000e+00> : vector<2x64xf32>
    %22 = tpu.matmul %21, %19, %cst_20 {dimension_numbers = #tpu.dot_dimension_numbers<[1], [1], [0], [0], [0, 0, 1, 0], [], []>} : vector<2x128xf32>, vector<64x128xf32>, vector<2x64xf32> -> vector<2x64xf32>
    %c0_21 = arith.constant 0 : index
    %c0_22 = arith.constant 0 : index
    %23 = vector.load %arg11[%c0_21, %c0_22] : memref<2x64xf32, #tpu.memory_space<vmem>>, vector<2x64xf32>
    tpu.vector_store %arg11[%c0_21, %c0_22], %22 {strides = array<i32>} : memref<2x64xf32, #tpu.memory_space<vmem>>, vector<2x64xf32>,
    return
  }
  func.func @transform_0(%arg0: i32) -> (i32, i32) {
    %c0_i32 = arith.constant 0 : i32
    %c0_i32_0 = arith.constant 0 : i32
    %c0_i32_1 = arith.constant 0 : i32
    return %c0_i32, %c0_i32_0 : i32, i32
  }
  func.func @transform_1(%arg0: i32) -> (i32, i32) {
    %c0_i32 = arith.constant 0 : i32
    %c0_i32_0 = arith.constant 0 : i32
    return %arg0, %c0_i32 : i32, i32
  }
  func.func @transform_2(%arg0: i32) -> (i32, i32) {
    %c0_i32 = arith.constant 0 : i32
    %c0_i32_0 = arith.constant 0 : i32
    return %arg0, %c0_i32 : i32, i32
  }
  func.func @transform_3(%arg0: i32) -> (i32, i32) {
    %c0_i32 = arith.constant 0 : i32
    %c0_i32_0 = arith.constant 0 : i32
    return %arg0, %c0_i32 : i32, i32
  }
  func.func @transform_4(%arg0: i32) -> (i32, i32) {
    %c0_i32 = arith.constant 0 : i32
    %c0_i32_0 = arith.constant 0 : i32
    return %arg0, %c0_i32 : i32, i32
  }
  func.func @transform_5(%arg0: i32) -> (i32, i32) {
    %c0_i32 = arith.constant 0 : i32
    %c0_i32_0 = arith.constant 0 : i32
    %c0_i32_1 = arith.constant 0 : i32
    return %c0_i32, %c0_i32_0 : i32, i32
  }
  func.func @transform_6(%arg0: i32) -> (i32, i32) {
    %c0_i32 = arith.constant 0 : i32
    %c0_i32_0 = arith.constant 0 : i32
    %c0_i32_1 = arith.constant 0 : i32
    return %c0_i32, %c0_i32_0 : i32, i32
  }
  func.func @transform_7(%arg0: i32) -> (i32, i32) {
    %c0_i32 = arith.constant 0 : i32
    %c0_i32_0 = arith.constant 0 : i32
    %c0_i32_1 = arith.constant 0 : i32
    return %c0_i32, %c0_i32_0 : i32, i32
  }
  func.func @transform_8(%arg0: i32) -> (i32, i32) {
    %c0_i32 = arith.constant 0 : i32
    %c0_i32_0 = arith.constant 0 : i32
    %c0_i32_1 = arith.constant 0 : i32
    return %c0_i32, %c0_i32_0 : i32, i32
  }
  func.func @transform_9(%arg0: i32) -> (i32, i32) {
    %c0_i32 = arith.constant 0 : i32
    %c0_i32_0 = arith.constant 0 : i32
    return %arg0, %c0_i32 : i32, i32
  }
  func.func @transform_10(%arg0: i32) -> (i32, i32) {
    %c0_i32 = arith.constant 0 : i32
    %c0_i32_0 = arith.constant 0 : i32
    return %c0_i32, %arg0 : i32, i32
  }
}

module attributes {stable_mosaic.version = 11 : i64} {
  func.func @_triplet_encoder_kernel(%arg0: i32, %arg1: memref<64x128xf32, #tpu.memory_space<vmem>>, %arg2: memref<64x128xf32, #tpu.memory_space<vmem>>, %arg3: memref<64x128xf32, #tpu.memory_space<vmem>>, %arg4: memref<64x128xf32, #tpu.memory_space<vmem>>, %arg5: memref<128x128xbf16, #tpu.memory_space<vmem>>, %arg6: memref<1x128xf32, #tpu.memory_space<vmem>>, %arg7: memref<128x128xbf16, #tpu.memory_space<vmem>>, %arg8: memref<1x128xf32, #tpu.memory_space<vmem>>, %arg9: memref<64x128xf32, #tpu.memory_space<vmem>>) attributes {dimension_semantics = [#tpu.dimension_semantics<parallel>], iteration_bounds = array<i64: 1>, scalar_prefetch = 0 : i64, scratch_operands = 0 : i64, tpu.core_type = #tpu.core_type<tc>, window_params = [{transform_indices = @transform_0, window_bounds = array<i64: 64, 128>}, {transform_indices = @transform_1, window_bounds = array<i64: 64, 128>}, {transform_indices = @transform_2, window_bounds = array<i64: 64, 128>}, {transform_indices = @transform_3, window_bounds = array<i64: 64, 128>}, {pipeline_mode = #tpu.pipeline_mode<synchronous>, transform_indices = @transform_4, window_bounds = array<i64: 128, 128>}, {pipeline_mode = #tpu.pipeline_mode<synchronous>, transform_indices = @transform_5, window_bounds = array<i64: 1, 128>}, {pipeline_mode = #tpu.pipeline_mode<synchronous>, transform_indices = @transform_6, window_bounds = array<i64: 128, 128>}, {pipeline_mode = #tpu.pipeline_mode<synchronous>, transform_indices = @transform_7, window_bounds = array<i64: 1, 128>}, {transform_indices = @transform_8, window_bounds = array<i64: 64, 128>}]} {
    %c0 = arith.constant 0 : index
    %c0_0 = arith.constant 0 : index
    %0 = vector.load %arg1[%c0, %c0_0] : memref<64x128xf32, #tpu.memory_space<vmem>>, vector<64x128xf32>
    %c0_1 = arith.constant 0 : index
    %c0_2 = arith.constant 0 : index
    %1 = vector.load %arg2[%c0_1, %c0_2] : memref<64x128xf32, #tpu.memory_space<vmem>>, vector<64x128xf32>
    %2 = arith.addf %0, %1 : vector<64x128xf32>
    %c0_3 = arith.constant 0 : index
    %c0_4 = arith.constant 0 : index
    %3 = vector.load %arg3[%c0_3, %c0_4] : memref<64x128xf32, #tpu.memory_space<vmem>>, vector<64x128xf32>
    %4 = arith.addf %2, %3 : vector<64x128xf32>
    %c0_5 = arith.constant 0 : index
    %c0_6 = arith.constant 0 : index
    %5 = vector.load %arg4[%c0_5, %c0_6] : memref<64x128xf32, #tpu.memory_space<vmem>>, vector<64x128xf32>
    %6 = arith.addf %4, %5 : vector<64x128xf32>
    %7 = arith.truncf %6 : vector<64x128xf32> to vector<64x128xbf16>
    %c0_7 = arith.constant 0 : index
    %c0_8 = arith.constant 0 : index
    %8 = vector.load %arg5[%c0_7, %c0_8] : memref<128x128xbf16, #tpu.memory_space<vmem>>, vector<128x128xbf16>
    %cst = arith.constant dense<0.000000e+00> : vector<64x128xf32>
    %9 = tpu.matmul %7, %8, %cst {dimension_numbers = #tpu.dot_dimension_numbers<[1], [0], [0], [1], [0, 0, 1, 1], [], []>} : vector<64x128xbf16>, vector<128x128xbf16>, vector<64x128xf32> -> vector<64x128xf32>
    %c0_9 = arith.constant 0 : index
    %c0_10 = arith.constant 0 : index
    %10 = vector.load %arg6[%c0_9, %c0_10] : memref<1x128xf32, #tpu.memory_space<vmem>>, vector<1x128xf32>
    %11 = vector.broadcast %10 : vector<1x128xf32> to vector<64x128xf32>
    %12 = arith.addf %9, %11 : vector<64x128xf32>
    %13 = math.tanh %12 : vector<64x128xf32>
    %14 = arith.truncf %13 : vector<64x128xf32> to vector<64x128xbf16>
    %c0_11 = arith.constant 0 : index
    %c0_12 = arith.constant 0 : index
    %15 = vector.load %arg7[%c0_11, %c0_12] : memref<128x128xbf16, #tpu.memory_space<vmem>>, vector<128x128xbf16>
    %cst_13 = arith.constant dense<0.000000e+00> : vector<64x128xf32>
    %16 = tpu.matmul %14, %15, %cst_13 {dimension_numbers = #tpu.dot_dimension_numbers<[1], [0], [0], [1], [0, 0, 1, 1], [], []>} : vector<64x128xbf16>, vector<128x128xbf16>, vector<64x128xf32> -> vector<64x128xf32>
    %c0_14 = arith.constant 0 : index
    %c0_15 = arith.constant 0 : index
    %17 = vector.load %arg8[%c0_14, %c0_15] : memref<1x128xf32, #tpu.memory_space<vmem>>, vector<1x128xf32>
    %18 = vector.broadcast %17 : vector<1x128xf32> to vector<64x128xf32>
    %19 = arith.addf %16, %18 : vector<64x128xf32>
    %c0_16 = arith.constant 0 : index
    %c0_17 = arith.constant 0 : index
    %20 = vector.load %arg9[%c0_16, %c0_17] : memref<64x128xf32, #tpu.memory_space<vmem>>, vector<64x128xf32>
    tpu.vector_store %arg9[%c0_16, %c0_17], %19 {strides = array<i32>} : memref<64x128xf32, #tpu.memory_space<vmem>>, vector<64x128xf32>,
    return
  }
  func.func @transform_0(%arg0: i32) -> (i32, i32) {
    %c0_i32 = arith.constant 0 : i32
    %c0_i32_0 = arith.constant 0 : i32
    return %arg0, %c0_i32 : i32, i32
  }
  func.func @transform_1(%arg0: i32) -> (i32, i32) {
    %c0_i32 = arith.constant 0 : i32
    %c0_i32_0 = arith.constant 0 : i32
    return %arg0, %c0_i32 : i32, i32
  }
  func.func @transform_2(%arg0: i32) -> (i32, i32) {
    %c0_i32 = arith.constant 0 : i32
    %c0_i32_0 = arith.constant 0 : i32
    return %arg0, %c0_i32 : i32, i32
  }
  func.func @transform_3(%arg0: i32) -> (i32, i32) {
    %c0_i32 = arith.constant 0 : i32
    %c0_i32_0 = arith.constant 0 : i32
    return %arg0, %c0_i32 : i32, i32
  }
  func.func @transform_4(%arg0: i32) -> (i32, i32) {
    %c0_i32 = arith.constant 0 : i32
    %c0_i32_0 = arith.constant 0 : i32
    %c0_i32_1 = arith.constant 0 : i32
    return %c0_i32, %c0_i32_0 : i32, i32
  }
  func.func @transform_5(%arg0: i32) -> (i32, i32) {
    %c0_i32 = arith.constant 0 : i32
    %c0_i32_0 = arith.constant 0 : i32
    %c0_i32_1 = arith.constant 0 : i32
    return %c0_i32, %c0_i32_0 : i32, i32
  }
  func.func @transform_6(%arg0: i32) -> (i32, i32) {
    %c0_i32 = arith.constant 0 : i32
    %c0_i32_0 = arith.constant 0 : i32
    %c0_i32_1 = arith.constant 0 : i32
    return %c0_i32, %c0_i32_0 : i32, i32
  }
  func.func @transform_7(%arg0: i32) -> (i32, i32) {
    %c0_i32 = arith.constant 0 : i32
    %c0_i32_0 = arith.constant 0 : i32
    %c0_i32_1 = arith.constant 0 : i32
    return %c0_i32, %c0_i32_0 : i32, i32
  }
  func.func @transform_8(%arg0: i32) -> (i32, i32) {
    %c0_i32 = arith.constant 0 : i32
    %c0_i32_0 = arith.constant 0 : i32
    return %arg0, %c0_i32 : i32, i32
  }
}

module attributes {stable_mosaic.version = 11 : i64} {
  func.func @_lm_score_batched_kernel(%arg0: memref<2x128xf32, #tpu.memory_space<vmem>>, %arg1: memref<2x40x128xf32, #tpu.memory_space<vmem>>, %arg2: memref<2x40xf32, #tpu.memory_space<vmem>>) attributes {dimension_semantics = [], scalar_prefetch = 0 : i64, scratch_operands = 0 : i64, tpu.core_type = #tpu.core_type<tc>} {
    %c0 = arith.constant 0 : index
    %c0_0 = arith.constant 0 : index
    %0 = vector.load %arg0[%c0, %c0_0] : memref<2x128xf32, #tpu.memory_space<vmem>>, vector<2x128xf32>
    %1 = vector.shape_cast %0 : vector<2x128xf32> to vector<2x1x128xf32>
    %c0_1 = arith.constant 0 : index
    %c0_2 = arith.constant 0 : index
    %c0_3 = arith.constant 0 : index
    %2 = vector.load %arg1[%c0_1, %c0_2, %c0_3] : memref<2x40x128xf32, #tpu.memory_space<vmem>>, vector<2x40x128xf32>
    %3 = vector.broadcast %1 : vector<2x1x128xf32> to vector<2x40x128xf32>
    %4 = arith.mulf %3, %2 : vector<2x40x128xf32>
    %cst = arith.constant dense<0.000000e+00> : vector<2x40xf32>
    %5 = vector.multi_reduction <add>, %4, %cst [2] : vector<2x40x128xf32> to vector<2x40xf32>
    %c0_4 = arith.constant 0 : index
    %c0_5 = arith.constant 0 : index
    %6 = vector.load %arg2[%c0_4, %c0_5] : memref<2x40xf32, #tpu.memory_space<vmem>>, vector<2x40xf32>
    tpu.vector_store %arg2[%c0_4, %c0_5], %5 {strides = array<i32>} : memref<2x40xf32, #tpu.memory_space<vmem>>, vector<2x40xf32>,
    return
  }
}

</mosaic_0001>

<bundles_post_ra>
// kernel: sfavel_forward.3
= control target key start
LH: loop header
LB: loop body
LE: loop exit
PB: predicated region body
PF: predicated region fallthrough
CT: control target
= control target key end

     0   :  { %vm621_vm0 = vmmov 0   ;;  %vm458_vm1 = vcmask 517120   ;;  %s857_s5 = inlined_call_operand.vmem [shape: bf16[128,128], index: 5, kind: input, shape index: {}]   ;;  %s858_s1 = inlined_call_operand.vmem [shape: f32[64,128], index: 1, kind: input, shape index: {}]   ;;  %s859_s2 = inlined_call_operand.vmem [shape: f32[64,128], index: 2, kind: input, shape index: {}]   ;;  %s860_s3 = inlined_call_operand.vmem [shape: f32[64,128], index: 3, kind: input, shape index: {}]   ;;  %s861_s4 = inlined_call_operand.vmem [shape: f32[64,128], index: 4, kind: input, shape index: {}]   ;;  %s862_s7 = inlined_call_operand.vmem [shape: bf16[128,128], index: 7, kind: input, shape index: {}]   ;;  %s863_s6 = inlined_call_operand.vmem [shape: f32[1,128], index: 6, kind: input, shape index: {}]   ;;  %s864_s8 = inlined_call_operand.vmem [shape: f32[1,128], index: 8, kind: input, shape index: {}]   ;;  %s865_s9 = inlined_call_operand.vmem [shape: f32[64,128], index: 9, kind: output, shape index: {0}]   ;;  %s866_s0 = inlined_call_operand.vmem [shape: f32[2,128], index: 0, kind: input, shape index: {}]   ;;  %s867_s10 = inlined_call_operand.vmem [shape: f32[2,64], index: 10, kind: output, shape index: {1}]  }
   0x1   :  { %v588_v0 = vld [vmem:[%s857_s5 + $0x38] sm:$0xff]   ;;  %v589_v1 = vld [vmem:[%s857_s5 + $0x30] sm:$0xff]   ;;  %v590_v2 = vld [vmem:[%s857_s5 + $0x28] sm:$0xff]  }
   0x2   :  { %519 = vmatprep.subr.bf16.mxu0 %v588_v0  ;;  %v591_v3 = vld [vmem:[%s857_s5 + $0x20] sm:$0xff]   ;;  %v36_v5 = vld [vmem:[%s858_s1 + $0x8] sm:$0xff]  ;;  %v592_v15 = vld [vmem:[%s857_s5 + $0x18] sm:$0xff]  }
   0x3   :  { %520 = vmatpush3.bf16.msra.mxu0 %v588_v0  ;;  %v35_v4 = vld [vmem:[%s858_s1] sm:$0xff]  ;;  %v44_v7 = vld [vmem:[%s859_s2 + $0x8] sm:$0xff]  ;;  %v593_v18 = vld [vmem:[%s857_s5 + $0x10] sm:$0xff]  }
   0x4   :  { %521 = vmatprep.subr.bf16.mxu0 %v589_v1  ;;  %v43_v6 = vld [vmem:[%s859_s2] sm:$0xff]  ;;  %v60_v10 = vld [vmem:[%s860_s3 + $0x8] sm:$0xff]  ;;  %v52_v11 = vadd.f32 %v44_v7, %v36_v5  ;;  %v37_v20 = vld [vmem:[%s858_s1 + $0x10] sm:$0xff] }
   0x5   :  { %v51_v8 = vadd.f32 %v43_v6, %v35_v4  ;;  %v59_v9 = vld [vmem:[%s860_s3] sm:$0xff]  ;;  %v76_v14 = vld [vmem:[%s861_s4 + $0x8] sm:$0xff]  ;;  %v38_v21 = vld [vmem:[%s858_s1 + $0x18] sm:$0xff] }
   0x6   :  { %v75_v12 = vld [vmem:[%s861_s4] sm:$0xff]  ;;  %v68_v16 = vadd.f32 %v60_v10, %v52_v11  ;;  %v45_v22 = vld [vmem:[%s859_s2 + $0x10] sm:$0xff]  ;;  %v46_v23 = vld [vmem:[%s859_s2 + $0x18] sm:$0xff] }
   0x7   :  { %522 = vmatpush3.bf16.msra.mxu0 %v589_v1  ;;  %v67_v13 = vadd.f32 %v59_v9, %v51_v8  ;;  %v39_v24 = vld [vmem:[%s858_s1 + $0x20] sm:$0xff]  ;;  %v40_v26 = vld [vmem:[%s858_s1 + $0x28] sm:$0xff]  ;;  %v61_v29 = vld [vmem:[%s860_s3 + $0x10] sm:$0xff]  ;;  %v53_v32 = vadd.f32 %v45_v22, %v37_v20  ;;  %v54_v33 = vadd.f32 %v46_v23, %v38_v21 }
   0x8   :  { %523 = vmatprep.subr.bf16.mxu0 %v590_v2  ;;  %v84_v19 = vadd.f32 %v76_v14, %v68_v16  ;;  %v47_v27 = vld [vmem:[%s859_s2 + $0x20] sm:$0xff]  ;;  %v48_v28 = vld [vmem:[%s859_s2 + $0x28] sm:$0xff]  ;;  %v62_v30 = vld [vmem:[%s860_s3 + $0x18] sm:$0xff] }
   0x9   :  { %v83_v17 = vadd.f32 %v75_v12, %v67_v13  ;;  %v594_v31 = vld [vmem:[%s857_s5 + $0x8] sm:$0xff]   ;;  %v63_v34 = vld [vmem:[%s860_s3 + $0x20] sm:$0xff]  ;;  %v55_v36 = vadd.f32 %v47_v27, %v39_v24  ;;  %v56_v37 = vadd.f32 %v48_v28, %v40_v26  ;;  %v596_v38 = vld [vmem:[%s862_s7 + $0x38] sm:$0xff]   ;;  %v69_v47 = vadd.f32 %v61_v29, %v53_v32 }
   0xa   :  { %v64_v35 = vld [vmem:[%s860_s3 + $0x28] sm:$0xff]  ;;  %v597_v39 = vld [vmem:[%s862_s7 + $0x30] sm:$0xff]   ;;  %v78_v41 = vld [vmem:[%s861_s4 + $0x18] sm:$0xff]  ;;  %543 = vmatprep.subr.bf16.mxu1 %v596_v38  ;;  %v70_v48 = vadd.f32 %v62_v30, %v54_v33 }
   0xb   :  { %524 = vmatpush3.bf16.msra.mxu0 %v590_v2  ;;  %v91_v25 = vpack.c.bf16 %v84_v19, %v83_v17  ;;  %v77_v40 = vld [vmem:[%s861_s4 + $0x10] sm:$0xff]  ;;  %v42_v43 = vld [vmem:[%s858_s1 + $0x38] sm:$0xff]  ;;  %v595_v46 = vld [vmem:[%s857_s5] sm:$0xff]   ;;  %544 = vmatpush3.bf16.msra.mxu1 %v596_v38  ;;  %v71_v50 = vadd.f32 %v63_v34, %v55_v36  ;;  %v72_v51 = vadd.f32 %v64_v35, %v56_v37 }
   0xc   :  { %525 = vmatprep.subr.bf16.mxu0 %v591_v3  ;;  %v41_v42 = vld [vmem:[%s858_s1 + $0x30] sm:$0xff]  ;;  %v50_v45 = vld [vmem:[%s859_s2 + $0x38] sm:$0xff]  ;;  %v79_v49 = vld [vmem:[%s861_s4 + $0x20] sm:$0xff]  ;;  %545 = vmatprep.subr.bf16.mxu1 %v597_v39  ;;  %v85_v53 = vadd.f32 %v77_v40, %v69_v47  ;;  %v86_v54 = vadd.f32 %v78_v41, %v70_v48  ;;  %v620_v41 = vmov 0.0  }
   0xd   :  { %535 = vmatprep.mubr.bf16.mxu0 %v91_v25  ;;  %v49_v44 = vld [vmem:[%s859_s2 + $0x30] sm:$0xff]  ;;  %v80_v52 = vld [vmem:[%s861_s4 + $0x28] sm:$0xff]  ;;  %v58_v56 = vadd.f32 %v50_v45, %v42_v43  ;;  %v87_v57 = vadd.f32 %v79_v49, %v71_v50  ;;  %v66_v60 = vld [vmem:[%s860_s3 + $0x38] sm:$0xff] }
   0xe   :  { %v57_v55 = vadd.f32 %v49_v44, %v41_v42  ;;  %v88_v58 = vadd.f32 %v80_v52, %v72_v51  ;;  %v65_v59 = vld [vmem:[%s860_s3 + $0x30] sm:$0xff]  ;;  %v92_v61 = vpack.c.bf16 %v86_v54, %v85_v53  ;;  %v82_v2 = vld [vmem:[%s861_s4 + $0x38] sm:$0xff]  ;;  %v598_v6 = vld [vmem:[%s862_s7 + $0x28] sm:$0xff]  }
   0xf   :  { %526 = vmatpush3.bf16.msra.mxu0 %v591_v3  ;;  %546 = vmatpush3.bf16.msra.mxu1 %v597_v39  ;;  %v74_v63 = vadd.f32 %v66_v60, %v58_v56  ;;  %v81_v1 = vld [vmem:[%s861_s4 + $0x30] sm:$0xff]  ;;  %v599_v7 = vld [vmem:[%s862_s7 + $0x20] sm:$0xff]   ;;  %v600_v8 = vld [vmem:[%s862_s7 + $0x18] sm:$0xff]  }
  0x10   :  { %527 = vmatprep.subr.bf16.mxu0 %v592_v15  ;;  %v73_v62 = vadd.f32 %v65_v59, %v57_v55  ;;  %v93_v0 = vpack.c.bf16 %v88_v58, %v87_v57  ;;  %547 = vmatprep.subr.bf16.mxu1 %v598_v6  ;;  %v601_v9 = vld [vmem:[%s862_s7 + $0x10] sm:$0xff]   ;;  %v602_v10 = vld [vmem:[%s862_s7 + $0x8] sm:$0xff]   ;;  %v603_v11 = vld [vmem:[%s862_s7] sm:$0xff]  }
  0x11   :  { %v90_v4 = vadd.f32 %v82_v2, %v74_v63  ;;  %v468_v13 = vld [vmem:[%s863_s6] ss:$0 sm:$0xff] }
  0x12   :  { %v89_v3 = vadd.f32 %v81_v1, %v73_v62  ;;  %v477_v42 = vld [vmem:[%s864_s8] ss:$0 sm:$0xff] }
  0x13   :  { %528 = vmatpush3.bf16.msra.mxu0 %v592_v15  ;;  %548 = vmatpush3.bf16.msra.mxu1 %v598_v6  ;;  %v387_v59 = vld [vmem:[%s866_s0] sm:$0x3] }
  0x14   :  { %529 = vmatprep.subr.bf16.mxu0 %v593_v18  ;;  %v94_v5 = vpack.c.bf16 %v90_v4, %v89_v3  ;;  %549 = vmatprep.subr.bf16.mxu1 %v599_v7 }
  0x17   :  { %530 = vmatpush3.bf16.msra.mxu0 %v593_v18  ;;  %550 = vmatpush3.bf16.msra.mxu1 %v599_v7 }
  0x18   :  { %531 = vmatprep.subr.bf16.mxu0 %v594_v31  ;;  %551 = vmatprep.subr.bf16.mxu1 %v600_v8 }
  0x1b   :  { %532 = vmatpush3.bf16.msra.mxu0 %v594_v31  ;;  %552 = vmatpush3.bf16.msra.mxu1 %v600_v8 }
  0x1c   :  { %533 = vmatprep.subr.bf16.mxu0 %v595_v46  ;;  %553 = vmatprep.subr.bf16.mxu1 %v601_v9 }
  0x1f   :  { %534 = vmatpush3.bf16.msra.mxu0 %v595_v46  ;;  %554 = vmatpush3.bf16.msra.mxu1 %v601_v9 }
  0x20   :  { %555 = vmatprep.subr.bf16.mxu1 %v602_v10  ;;  %567 = vmatprep.subr.mxu0 %v620_v41 }
  0x22   :  { %536 = vmatmul.mubr.bf16.vlgmr.msra.gmra.mxu0 %v92_v61 }
  0x23   :  { %539 = vmatprep.mubr.bf16.mxu0 %v93_v0  ;;  %556 = vmatpush3.bf16.msra.mxu1 %v602_v10 }
  0x24   :  { %557 = vmatprep.subr.bf16.mxu1 %v603_v11 }
  0x27   :  { %558 = vmatpush3.bf16.msra.mxu1 %v603_v11 }
  0x2a   :  { %540 = vmatmul.mubr.bf16.gmra.mxu0 %v94_v5 }
  0x2b   :  { %583 = vmatprep.mubr.msk.f32.mxu0 %vm621_vm0, %v620_v41 }
  0xe2   :  { %v537_v12 = vpop.f32.mrf.mxu0 }
  0xe3   :  { %v209_v18 = vadd.f32 %v537_v12, %v468_v13 }
  0xe4   :  { %v200_v14 = vpop.f32.mrf.mxu0 }
  0xe5   :  { %v201_v15 = vadd.f32 %v468_v13, %v200_v14 }
  0xe6   :  { %v538_v16 = vpop.f32.mrf.mxu0 }
  0xe7   :  { %v212_v17 = vadd.f32 %v538_v16, %v468_v13  ;;  %604 = vtanh.f32 %v201_v15 }
  0xe8   :  { %v203_v19 = vpop.f32.mrf.mxu0 }
  0xe9   :  { %v204_v20 = vadd.f32 %v468_v13, %v203_v19  ;;  %606 = vtanh.f32 %v212_v17 }
  0xea   :  { %v541_v21 = vpop.f32.mrf.mxu0 }
  0xeb   :  { %608 = vtanh.f32 %v204_v20  ;;  %v225_v26 = vadd.f32 %v541_v21, %v468_v13 }
  0xec   :  { %610 = vtanh.f32 %v209_v18  ;;  %v216_v22 = vpop.f32.mrf.mxu0 }
  0xed   :  { %v217_v23 = vadd.f32 %v468_v13, %v216_v22 }
  0xee   :  { %v542_v24 = vpop.f32.mrf.mxu0 }
  0xef   :  { %v228_v25 = vadd.f32 %v542_v24, %v468_v13  ;;  %612 = vtanh.f32 %v217_v23 }
  0xf0   :  { %v219_v27 = vpop.f32.mrf.mxu0 }
  0xf1   :  { %v220_v28 = vadd.f32 %v468_v13, %v219_v27  ;;  %614 = vtanh.f32 %v228_v25 }
  0xf3   :  { %616 = vtanh.f32 %v220_v28 }
  0xf4   :  { %618 = vtanh.f32 %v225_v26  ;;  %v605_v29 = vpop.eup %604 }
  0xf6   :  { %v607_v30 = vpop.eup %606 }
  0xf8   :  { %v609_v31 = vpop.eup %608 }
  0xf9   :  { %v611_v32 = vpop.eup %610  ;;  %v239_v33 = vpack.c.bf16 %v609_v31, %v605_v29 }
  0xfa   :  { %v240_v34 = vpack.c.bf16 %v607_v30, %v611_v32 }
  0xfb   :  { %559 = vmatprep.mubr.bf16.mxu1 %v239_v33 }
  0xfc   :  { %560 = vmatmul.mubr.bf16.vlgmr.msra.gmra.mxu1 %v240_v34  ;;  %v613_v35 = vpop.eup %612 }
  0xfe   :  { %v615_v36 = vpop.eup %614 }
 0x100   :  { %v617_v37 = vpop.eup %616 }
 0x101   :  { %v619_v38 = vpop.eup %618  ;;  %v241_v39 = vpack.c.bf16 %v617_v37, %v613_v35 }
 0x102   :  { %v242_v40 = vpack.c.bf16 %v615_v36, %v619_v38 }
 0x103   :  { %563 = vmatprep.mubr.bf16.mxu1 %v241_v39 }
 0x104   :  { %564 = vmatmul.mubr.bf16.gmra.mxu1 %v242_v40 }
 0x1bc   :  { %v561_v43 = vpop.f32.mrf.mxu1 }
 0x1bd   :  { %v357_v44 = vadd.f32 %v561_v43, %v477_v42 }
 0x1be   :  { %v348_v45 = vpop.f32.mrf.mxu1 }
 0x1bf   :  { %381 = vst [vmem:[%s865_s9 + $0x10] sm:$0xff] %v357_v44  ;;  %v349_v46 = vadd.f32 %v477_v42, %v348_v45 }
 0x1c0   :  { %v562_v47 = vpop.f32.mrf.mxu1 }
 0x1c1   :  { %379 = vst [vmem:[%s865_s9] sm:$0xff] %v349_v46  ;;  %v360_v48 = vadd.f32 %v562_v47, %v477_v42 }
 0x1c2   :  { %v351_v49 = vpop.f32.mrf.mxu1 }
 0x1c3   :  { %382 = vst [vmem:[%s865_s9 + $0x18] sm:$0xff] %v360_v48  ;;  %v352_v50 = vadd.f32 %v477_v42, %v351_v49 }
 0x1c4   :  { %v565_v51 = vpop.f32.mrf.mxu1 }
 0x1c5   :  { %380 = vst [vmem:[%s865_s9 + $0x8] sm:$0xff] %v352_v50  ;;  %v373_v52 = vadd.f32 %v565_v51, %v477_v42 }
 0x1c6   :  { %v364_v53 = vpop.f32.mrf.mxu1 }
 0x1c7   :  { %385 = vst [vmem:[%s865_s9 + $0x30] sm:$0xff] %v373_v52  ;;  %v365_v54 = vadd.f32 %v477_v42, %v364_v53 }
 0x1c8   :  { %v566_v55 = vpop.f32.mrf.mxu1 }
 0x1c9   :  { %383 = vst [vmem:[%s865_s9 + $0x20] sm:$0xff] %v365_v54  ;;  %v376_v56 = vadd.f32 %v566_v55, %v477_v42 }
 0x1ca   :  { %v367_v57 = vpop.f32.mrf.mxu1 }
 0x1cb   :  { %386 = vst [vmem:[%s865_s9 + $0x38] sm:$0xff] %v376_v56  ;;  %v368_v58 = vadd.f32 %v477_v42, %v367_v57  ;;  %568 = vmatpush3.xpose.msra.mxu0 %v376_v56 }
 0x1cc   :  { %569 = vmatprep.subr.mxu0 %v620_v41 }
 0x1cd   :  { %384 = vst [vmem:[%s865_s9 + $0x28] sm:$0xff] %v368_v58 }
 0x1cf   :  { %570 = vmatpush3.xpose.msra.mxu0 %v373_v52 }
 0x1d0   :  { %571 = vmatprep.subr.mxu0 %v620_v41 }
 0x1d3   :  { %572 = vmatpush3.xpose.msra.mxu0 %v368_v58 }
 0x1d4   :  { %573 = vmatprep.subr.mxu0 %v620_v41 }
 0x1d7   :  { %574 = vmatpush3.xpose.msra.mxu0 %v365_v54 }
 0x1d8   :  { %575 = vmatprep.subr.mxu0 %v620_v41 }
 0x1db   :  { %576 = vmatpush3.xpose.msra.mxu0 %v360_v48 }
 0x1dc   :  { %577 = vmatprep.subr.mxu0 %v620_v41 }
 0x1df   :  { %578 = vmatpush3.xpose.msra.mxu0 %v357_v44 }
 0x1e0   :  { %579 = vmatprep.subr.mxu0 %v620_v41 }
 0x1e3   :  { %580 = vmatpush3.xpose.msra.mxu0 %v352_v50 }
 0x1e4   :  { %581 = vmatprep.subr.mxu0 %v620_v41 }
 0x1e7   :  { %582 = vmatpush3.xpose.msra.mxu0 %v349_v46 }
 0x1ea   :  { %584 = vmatmul.mubr.f32.vlgmr.msra.gmra.mxu0 %v387_v59 }
 0x2aa   :  { %v454_v60 = vpop.f32.mrf.mxu0 }
 0x2ab   :  { %459 = vst.msk [vmem:[%s867_s10] sm:$0x3] %vm458_vm1, %v454_v60 }
 0x2ac   :  { %v585_v61 = vpop.f32.mrf.mxu0 }

// kernel: sfavel_forward.4
= control target key start
LH: loop header
LB: loop body
LE: loop exit
PB: predicated region body
PF: predicated region fallthrough
CT: control target
= control target key end

     0   :  { %s727_s4 = inlined_call_operand.vmem [shape: bf16[128,128], index: 4, kind: input, shape index: {}]   ;;  %s728_s0 = inlined_call_operand.vmem [shape: f32[64,128], index: 0, kind: input, shape index: {}]   ;;  %s729_s1 = inlined_call_operand.vmem [shape: f32[64,128], index: 1, kind: input, shape index: {}]   ;;  %s730_s2 = inlined_call_operand.vmem [shape: f32[64,128], index: 2, kind: input, shape index: {}]   ;;  %s731_s3 = inlined_call_operand.vmem [shape: f32[64,128], index: 3, kind: input, shape index: {}]   ;;  %s732_s6 = inlined_call_operand.vmem [shape: bf16[128,128], index: 6, kind: input, shape index: {}]   ;;  %s733_s5 = inlined_call_operand.vmem [shape: f32[1,128], index: 5, kind: input, shape index: {}]   ;;  %s734_s7 = inlined_call_operand.vmem [shape: f32[1,128], index: 7, kind: input, shape index: {}]   ;;  %s735_s8 = inlined_call_operand.vmem [shape: f32[64,128], index: 8, kind: output, shape index: {}]  }
   0x1   :  { %v476_v0 = vld [vmem:[%s727_s4 + $0x38] sm:$0xff]   ;;  %v477_v1 = vld [vmem:[%s727_s4 + $0x30] sm:$0xff]   ;;  %v478_v2 = vld [vmem:[%s727_s4 + $0x28] sm:$0xff]  }
   0x2   :  { %428 = vmatprep.subr.bf16.mxu0 %v476_v0  ;;  %v479_v3 = vld [vmem:[%s727_s4 + $0x20] sm:$0xff]   ;;  %v31_v5 = vld [vmem:[%s728_s0 + $0x8] sm:$0xff]  ;;  %v480_v15 = vld [vmem:[%s727_s4 + $0x18] sm:$0xff]  }
   0x3   :  { %429 = vmatpush3.bf16.msra.mxu0 %v476_v0  ;;  %v30_v4 = vld [vmem:[%s728_s0] sm:$0xff]  ;;  %v39_v7 = vld [vmem:[%s729_s1 + $0x8] sm:$0xff]  ;;  %v481_v18 = vld [vmem:[%s727_s4 + $0x10] sm:$0xff]  }
   0x4   :  { %430 = vmatprep.subr.bf16.mxu0 %v477_v1  ;;  %v38_v6 = vld [vmem:[%s729_s1] sm:$0xff]  ;;  %v55_v10 = vld [vmem:[%s730_s2 + $0x8] sm:$0xff]  ;;  %v47_v11 = vadd.f32 %v39_v7, %v31_v5  ;;  %v32_v20 = vld [vmem:[%s728_s0 + $0x10] sm:$0xff] }
   0x5   :  { %v46_v8 = vadd.f32 %v38_v6, %v30_v4  ;;  %v54_v9 = vld [vmem:[%s730_s2] sm:$0xff]  ;;  %v71_v14 = vld [vmem:[%s731_s3 + $0x8] sm:$0xff]  ;;  %v33_v21 = vld [vmem:[%s728_s0 + $0x18] sm:$0xff] }
   0x6   :  { %v70_v12 = vld [vmem:[%s731_s3] sm:$0xff]  ;;  %v63_v16 = vadd.f32 %v55_v10, %v47_v11  ;;  %v40_v22 = vld [vmem:[%s729_s1 + $0x10] sm:$0xff]  ;;  %v41_v23 = vld [vmem:[%s729_s1 + $0x18] sm:$0xff] }
   0x7   :  { %431 = vmatpush3.bf16.msra.mxu0 %v477_v1  ;;  %v62_v13 = vadd.f32 %v54_v9, %v46_v8  ;;  %v34_v24 = vld [vmem:[%s728_s0 + $0x20] sm:$0xff]  ;;  %v35_v26 = vld [vmem:[%s728_s0 + $0x28] sm:$0xff]  ;;  %v56_v29 = vld [vmem:[%s730_s2 + $0x10] sm:$0xff]  ;;  %v48_v32 = vadd.f32 %v40_v22, %v32_v20  ;;  %v49_v33 = vadd.f32 %v41_v23, %v33_v21 }
   0x8   :  { %432 = vmatprep.subr.bf16.mxu0 %v478_v2  ;;  %v79_v19 = vadd.f32 %v71_v14, %v63_v16  ;;  %v42_v27 = vld [vmem:[%s729_s1 + $0x20] sm:$0xff]  ;;  %v43_v28 = vld [vmem:[%s729_s1 + $0x28] sm:$0xff]  ;;  %v57_v30 = vld [vmem:[%s730_s2 + $0x18] sm:$0xff] }
   0x9   :  { %v78_v17 = vadd.f32 %v70_v12, %v62_v13  ;;  %v482_v31 = vld [vmem:[%s727_s4 + $0x8] sm:$0xff]   ;;  %v58_v34 = vld [vmem:[%s730_s2 + $0x20] sm:$0xff]  ;;  %v50_v36 = vadd.f32 %v42_v27, %v34_v24  ;;  %v51_v37 = vadd.f32 %v43_v28, %v35_v26  ;;  %v484_v38 = vld [vmem:[%s732_s6 + $0x38] sm:$0xff]   ;;  %v64_v47 = vadd.f32 %v56_v29, %v48_v32 }
   0xa   :  { %v59_v35 = vld [vmem:[%s730_s2 + $0x28] sm:$0xff]  ;;  %v485_v39 = vld [vmem:[%s732_s6 + $0x30] sm:$0xff]   ;;  %v73_v41 = vld [vmem:[%s731_s3 + $0x18] sm:$0xff]  ;;  %452 = vmatprep.subr.bf16.mxu1 %v484_v38  ;;  %v65_v48 = vadd.f32 %v57_v30, %v49_v33 }
   0xb   :  { %433 = vmatpush3.bf16.msra.mxu0 %v478_v2  ;;  %v86_v25 = vpack.c.bf16 %v79_v19, %v78_v17  ;;  %v72_v40 = vld [vmem:[%s731_s3 + $0x10] sm:$0xff]  ;;  %v37_v43 = vld [vmem:[%s728_s0 + $0x38] sm:$0xff]  ;;  %v483_v46 = vld [vmem:[%s727_s4] sm:$0xff]   ;;  %453 = vmatpush3.bf16.msra.mxu1 %v484_v38  ;;  %v66_v50 = vadd.f32 %v58_v34, %v50_v36  ;;  %v67_v51 = vadd.f32 %v59_v35, %v51_v37 }
   0xc   :  { %434 = vmatprep.subr.bf16.mxu0 %v479_v3  ;;  %v36_v42 = vld [vmem:[%s728_s0 + $0x30] sm:$0xff]  ;;  %v45_v45 = vld [vmem:[%s729_s1 + $0x38] sm:$0xff]  ;;  %v74_v49 = vld [vmem:[%s731_s3 + $0x20] sm:$0xff]  ;;  %454 = vmatprep.subr.bf16.mxu1 %v485_v39  ;;  %v80_v53 = vadd.f32 %v72_v40, %v64_v47  ;;  %v81_v54 = vadd.f32 %v73_v41, %v65_v48 }
   0xd   :  { %444 = vmatprep.mubr.bf16.mxu0 %v86_v25  ;;  %v44_v44 = vld [vmem:[%s729_s1 + $0x30] sm:$0xff]  ;;  %v75_v52 = vld [vmem:[%s731_s3 + $0x28] sm:$0xff]  ;;  %v53_v56 = vadd.f32 %v45_v45, %v37_v43  ;;  %v82_v57 = vadd.f32 %v74_v49, %v66_v50  ;;  %v61_v60 = vld [vmem:[%s730_s2 + $0x38] sm:$0xff] }
   0xe   :  { %v52_v55 = vadd.f32 %v44_v44, %v36_v42  ;;  %v83_v58 = vadd.f32 %v75_v52, %v67_v51  ;;  %v60_v59 = vld [vmem:[%s730_s2 + $0x30] sm:$0xff]  ;;  %v87_v61 = vpack.c.bf16 %v81_v54, %v80_v53  ;;  %v77_v2 = vld [vmem:[%s731_s3 + $0x38] sm:$0xff]  ;;  %v486_v6 = vld [vmem:[%s732_s6 + $0x28] sm:$0xff]  }
   0xf   :  { %435 = vmatpush3.bf16.msra.mxu0 %v479_v3  ;;  %455 = vmatpush3.bf16.msra.mxu1 %v485_v39  ;;  %v69_v63 = vadd.f32 %v61_v60, %v53_v56  ;;  %v76_v1 = vld [vmem:[%s731_s3 + $0x30] sm:$0xff]  ;;  %v487_v7 = vld [vmem:[%s732_s6 + $0x20] sm:$0xff]   ;;  %v488_v8 = vld [vmem:[%s732_s6 + $0x18] sm:$0xff]  }
  0x10   :  { %436 = vmatprep.subr.bf16.mxu0 %v480_v15  ;;  %v68_v62 = vadd.f32 %v60_v59, %v52_v55  ;;  %v88_v0 = vpack.c.bf16 %v83_v58, %v82_v57  ;;  %456 = vmatprep.subr.bf16.mxu1 %v486_v6  ;;  %v489_v9 = vld [vmem:[%s732_s6 + $0x10] sm:$0xff]   ;;  %v490_v10 = vld [vmem:[%s732_s6 + $0x8] sm:$0xff]   ;;  %v491_v11 = vld [vmem:[%s732_s6] sm:$0xff]  }
  0x11   :  { %v85_v4 = vadd.f32 %v77_v2, %v69_v63  ;;  %v386_v13 = vld [vmem:[%s733_s5] ss:$0 sm:$0xff] }
  0x12   :  { %v84_v3 = vadd.f32 %v76_v1, %v68_v62  ;;  %v395_v41 = vld [vmem:[%s734_s7] ss:$0 sm:$0xff] }
  0x13   :  { %437 = vmatpush3.bf16.msra.mxu0 %v480_v15  ;;  %457 = vmatpush3.bf16.msra.mxu1 %v486_v6 }
  0x14   :  { %438 = vmatprep.subr.bf16.mxu0 %v481_v18  ;;  %v89_v5 = vpack.c.bf16 %v85_v4, %v84_v3  ;;  %458 = vmatprep.subr.bf16.mxu1 %v487_v7 }
  0x17   :  { %439 = vmatpush3.bf16.msra.mxu0 %v481_v18  ;;  %459 = vmatpush3.bf16.msra.mxu1 %v487_v7 }
  0x18   :  { %440 = vmatprep.subr.bf16.mxu0 %v482_v31  ;;  %460 = vmatprep.subr.bf16.mxu1 %v488_v8 }
  0x1b   :  { %441 = vmatpush3.bf16.msra.mxu0 %v482_v31  ;;  %461 = vmatpush3.bf16.msra.mxu1 %v488_v8 }
  0x1c   :  { %442 = vmatprep.subr.bf16.mxu0 %v483_v46  ;;  %462 = vmatprep.subr.bf16.mxu1 %v489_v9 }
  0x1f   :  { %443 = vmatpush3.bf16.msra.mxu0 %v483_v46  ;;  %463 = vmatpush3.bf16.msra.mxu1 %v489_v9 }
  0x20   :  { %464 = vmatprep.subr.bf16.mxu1 %v490_v10 }
  0x22   :  { %445 = vmatmul.mubr.bf16.vlgmr.msra.gmra.mxu0 %v87_v61 }
  0x23   :  { %448 = vmatprep.mubr.bf16.mxu0 %v88_v0  ;;  %465 = vmatpush3.bf16.msra.mxu1 %v490_v10 }
  0x24   :  { %466 = vmatprep.subr.bf16.mxu1 %v491_v11 }
  0x27   :  { %467 = vmatpush3.bf16.msra.mxu1 %v491_v11 }
  0x2a   :  { %449 = vmatmul.mubr.bf16.gmra.mxu0 %v89_v5 }
  0xe2   :  { %v446_v12 = vpop.f32.mrf.mxu0 }
  0xe3   :  { %v204_v18 = vadd.f32 %v446_v12, %v386_v13 }
  0xe4   :  { %v195_v14 = vpop.f32.mrf.mxu0 }
  0xe5   :  { %v196_v15 = vadd.f32 %v386_v13, %v195_v14 }
  0xe6   :  { %v447_v16 = vpop.f32.mrf.mxu0 }
  0xe7   :  { %v207_v17 = vadd.f32 %v447_v16, %v386_v13  ;;  %492 = vtanh.f32 %v196_v15 }
  0xe8   :  { %v198_v19 = vpop.f32.mrf.mxu0 }
  0xe9   :  { %v199_v20 = vadd.f32 %v386_v13, %v198_v19  ;;  %494 = vtanh.f32 %v207_v17 }
  0xea   :  { %v450_v21 = vpop.f32.mrf.mxu0 }
  0xeb   :  { %496 = vtanh.f32 %v199_v20  ;;  %v220_v26 = vadd.f32 %v450_v21, %v386_v13 }
  0xec   :  { %498 = vtanh.f32 %v204_v18  ;;  %v211_v22 = vpop.f32.mrf.mxu0 }
  0xed   :  { %v212_v23 = vadd.f32 %v386_v13, %v211_v22 }
  0xee   :  { %v451_v24 = vpop.f32.mrf.mxu0 }
  0xef   :  { %v223_v25 = vadd.f32 %v451_v24, %v386_v13  ;;  %500 = vtanh.f32 %v212_v23 }
  0xf0   :  { %v214_v27 = vpop.f32.mrf.mxu0 }
  0xf1   :  { %v215_v28 = vadd.f32 %v386_v13, %v214_v27  ;;  %502 = vtanh.f32 %v223_v25 }
  0xf3   :  { %504 = vtanh.f32 %v215_v28 }
  0xf4   :  { %506 = vtanh.f32 %v220_v26  ;;  %v493_v29 = vpop.eup %492 }
  0xf6   :  { %v495_v30 = vpop.eup %494 }
  0xf8   :  { %v497_v31 = vpop.eup %496 }
  0xf9   :  { %v499_v32 = vpop.eup %498  ;;  %v234_v33 = vpack.c.bf16 %v497_v31, %v493_v29 }
  0xfa   :  { %v235_v34 = vpack.c.bf16 %v495_v30, %v499_v32 }
  0xfb   :  { %468 = vmatprep.mubr.bf16.mxu1 %v234_v33 }
  0xfc   :  { %469 = vmatmul.mubr.bf16.vlgmr.msra.gmra.mxu1 %v235_v34  ;;  %v501_v35 = vpop.eup %500 }
  0xfe   :  { %v503_v36 = vpop.eup %502 }
 0x100   :  { %v505_v37 = vpop.eup %504 }
 0x101   :  { %v507_v38 = vpop.eup %506  ;;  %v236_v39 = vpack.c.bf16 %v505_v37, %v501_v35 }
 0x102   :  { %v237_v40 = vpack.c.bf16 %v503_v36, %v507_v38 }
 0x103   :  { %472 = vmatprep.mubr.bf16.mxu1 %v236_v39 }
 0x104   :  { %473 = vmatmul.mubr.bf16.gmra.mxu1 %v237_v40 }
 0x1bc   :  { %v470_v42 = vpop.f32.mrf.mxu1 }
 0x1bd   :  { %v352_v43 = vadd.f32 %v470_v42, %v395_v41 }
 0x1be   :  { %v343_v44 = vpop.f32.mrf.mxu1 }
 0x1bf   :  { %376 = vst [vmem:[%s735_s8 + $0x10] sm:$0xff] %v352_v43  ;;  %v344_v45 = vadd.f32 %v395_v41, %v343_v44 }
 0x1c0   :  { %v471_v46 = vpop.f32.mrf.mxu1 }
 0x1c1   :  { %374 = vst [vmem:[%s735_s8] sm:$0xff] %v344_v45  ;;  %v355_v47 = vadd.f32 %v471_v46, %v395_v41 }
 0x1c2   :  { %v346_v48 = vpop.f32.mrf.mxu1 }
 0x1c3   :  { %377 = vst [vmem:[%s735_s8 + $0x18] sm:$0xff] %v355_v47  ;;  %v347_v49 = vadd.f32 %v395_v41, %v346_v48 }
 0x1c4   :  { %v474_v50 = vpop.f32.mrf.mxu1 }
 0x1c5   :  { %375 = vst [vmem:[%s735_s8 + $0x8] sm:$0xff] %v347_v49  ;;  %v368_v51 = vadd.f32 %v474_v50, %v395_v41 }
 0x1c6   :  { %v359_v52 = vpop.f32.mrf.mxu1 }
 0x1c7   :  { %380 = vst [vmem:[%s735_s8 + $0x30] sm:$0xff] %v368_v51  ;;  %v360_v53 = vadd.f32 %v395_v41, %v359_v52 }
 0x1c8   :  { %v475_v54 = vpop.f32.mrf.mxu1 }
 0x1c9   :  { %378 = vst [vmem:[%s735_s8 + $0x20] sm:$0xff] %v360_v53  ;;  %v371_v55 = vadd.f32 %v475_v54, %v395_v41 }
 0x1ca   :  { %v362_v56 = vpop.f32.mrf.mxu1 }
 0x1cb   :  { %381 = vst [vmem:[%s735_s8 + $0x38] sm:$0xff] %v371_v55  ;;  %v363_v57 = vadd.f32 %v395_v41, %v362_v56 }
 0x1cd   :  { %379 = vst [vmem:[%s735_s8 + $0x28] sm:$0xff] %v363_v57 }

// kernel: sfavel_forward.5
= control target key start
LH: loop header
LB: loop body
LE: loop exit
PB: predicated region body
PF: predicated region fallthrough
CT: control target
= control target key end

     0   :  { %v24_v0 = vlaneseq  ;;  %v164_v2 = vmov 1966171168   ;;  %vm106_vm0 = vcmask 130112   ;;  %vm113_vm1 = vcmask 195712   ;;  %s216_s0 = inlined_call_operand.vmem [shape: f32[2,128], index: 0, kind: input, shape index: {}]   ;;  %s217_s1 = inlined_call_operand.vmem [shape: f32[2,40,128], index: 1, kind: input, shape index: {}]   ;;  %s218_s2 = inlined_call_operand.vmem [shape: f32[2,40], index: 2, kind: output, shape index: {}]  }
   0x1   :  { %v162_v1 = vld.sshfl [vmem:[%s216_s0] sm:$0x11 pattern:$0x75316420]  ;;  %v22_v3 = vunpack.c.l.s4 %v164_v2  ;;  %v40_v14 = vld [vmem:[%s217_s1 + $0x28] sm:$0xff]  ;;  %v41_v18 = vld [vmem:[%s217_s1 + $0x30] sm:$0xff] }
   0x2   :  { %v25_v4 = vshrl.u32 %v24_v0, 7  ;;  %v96_v5 = vand.u32 127, %v24_v0  ;;  %v20_v7 = vcombine.high %v162_v1, %v162_v1  ;;  %v35_v13 = vld [vmem:[%s217_s1] sm:$0xff]  ;;  %v36_v17 = vld [vmem:[%s217_s1 + $0x8] sm:$0xff]  ;;  %v37_v23 = vld [vmem:[%s217_s1 + $0x10] sm:$0xff]  ;;  %vm120_vm2 = vcmask 261312  }
   0x3   :  { %v23_v6 = vunpack.c.0.s8 %v22_v3  ;;  %v42_v24 = vld [vmem:[%s217_s1 + $0x38] sm:$0xff]  ;;  %v43_v28 = vld [vmem:[%s217_s1 + $0x40] sm:$0xff]  ;;  %v44_v32 = vld [vmem:[%s217_s1 + $0x48] sm:$0xff]  ;;  %vm127_vm3 = vcmask 326912   ;;  %vm153_vm4 = vcmask 1041409   ;;  %vm156_vm5 = vcmask 320512  }
   0x4   :  { %v99_v8 = vsub.s32 %v96_v5, %v25_v4  ;;  %v47_v10 = vsub.s32 0, %v25_v4  ;;  %v38_v27 = vld [vmem:[%s217_s1 + $0x18] sm:$0xff]  ;;  %v39_v31 = vld [vmem:[%s217_s1 + $0x20] sm:$0xff]  ;;  %v101_v33 = vadd.s32 4294967288, %v96_v5  ;;  %v108_v37 = vadd.s32 4294967280, %v96_v5 }
   0x5   :  { %v26_v9 = vsub.s32 %v23_v6, %v25_v4  ;;  %v115_v39 = vadd.s32 4294967272, %v96_v5  ;;  %v122_v41 = vadd.s32 4294967264, %v96_v5 }
   0x6   :  { %v104_v36 = vsub.s32 %v101_v33, %v25_v4  ;;  %v111_v38 = vsub.s32 %v108_v37, %v25_v4 }
   0x7   :  { %v27_v11 = vrot.slane %v162_v1, %v26_v9  ;;  %v34_v12 = vrot.slane %v20_v7, %v26_v9  ;;  %v118_v40 = vsub.s32 %v115_v39, %v25_v4  ;;  %v125_v42 = vsub.s32 %v122_v41, %v25_v4 }
   0x9   :  { %v48_v15 = vrot.slane %v27_v11, %v47_v10  ;;  %v52_v16 = vrot.slane %v34_v12, %v47_v10 }
   0xb   :  { %v55_v19 = vmul.f32 %v48_v15, %v35_v13  ;;  %v60_v20 = vmul.f32 %v52_v16, %v40_v14  ;;  %v56_v21 = vmul.f32 %v48_v15, %v36_v17  ;;  %v61_v22 = vmul.f32 %v52_v16, %v41_v18 }
   0xc   :  { %v57_v25 = vmul.f32 %v48_v15, %v37_v23  ;;  %v62_v26 = vmul.f32 %v52_v16, %v42_v24  ;;  %v58_v29 = vmul.f32 %v48_v15, %v38_v27  ;;  %v63_v30 = vmul.f32 %v52_v16, %v43_v28 }
   0xd   :  { %65 = vadd.xlane.f32.xlu0 %v55_v19  ;;  %75 = vadd.xlane.f32.xlu1 %v60_v20  ;;  %v59_v34 = vmul.f32 %v48_v15, %v39_v31  ;;  %v64_v35 = vmul.f32 %v52_v16, %v44_v32 }
  0x11   :  { %67 = vadd.xlane.f32.xlu0 %v56_v21  ;;  %77 = vadd.xlane.f32.xlu1 %v61_v22 }
  0x15   :  { %69 = vadd.xlane.f32.xlu0 %v57_v25  ;;  %79 = vadd.xlane.f32.xlu1 %v62_v26 }
  0x19   :  { %71 = vadd.xlane.f32.xlu0 %v58_v29  ;;  %81 = vadd.xlane.f32.xlu1 %v63_v30 }
  0x1d   :  { %73 = vadd.xlane.f32.xlu0 %v59_v34  ;;  %83 = vadd.xlane.f32.xlu1 %v64_v35 }
  0x96   :  { %v66_v43 = vpop.xlane.xlu0 %65  ;;  %v76_v44 = vpop.xlane.xlu1 %75 }
  0x97   :  { %v100_v47 = vrot.slane %v66_v43, %v99_v8  ;;  %v132_v48 = vrot.slane %v76_v44, %v99_v8 }
  0x9a   :  { %v68_v45 = vpop.xlane.xlu0 %67  ;;  %v78_v46 = vpop.xlane.xlu1 %77 }
  0x9b   :  { %v105_v49 = vrot.slane %v68_v45, %v104_v36  ;;  %v136_v50 = vrot.slane %v78_v46, %v104_v36 }
  0x9d   :  { %v107_v51 = vsel %vm106_vm0, %v105_v49, %v100_v47  ;;  %v137_v52 = vsel %vm106_vm0, %v136_v50, %v132_v48 }
  0x9e   :  { %v70_v53 = vpop.xlane.xlu0 %69  ;;  %v80_v54 = vpop.xlane.xlu1 %79 }
  0x9f   :  { %v112_v55 = vrot.slane %v70_v53, %v111_v38  ;;  %v141_v56 = vrot.slane %v80_v54, %v111_v38 }
  0xa1   :  { %v114_v57 = vsel %vm113_vm1, %v112_v55, %v107_v51  ;;  %v142_v58 = vsel %vm113_vm1, %v141_v56, %v137_v52 }
  0xa2   :  { %v72_v59 = vpop.xlane.xlu0 %71  ;;  %v82_v60 = vpop.xlane.xlu1 %81 }
  0xa3   :  { %v119_v61 = vrot.slane %v72_v59, %v118_v40  ;;  %v146_v62 = vrot.slane %v82_v60, %v118_v40 }
  0xa5   :  { %v121_v63 = vsel %vm120_vm2, %v119_v61, %v114_v57  ;;  %v147_v0 = vsel %vm120_vm2, %v146_v62, %v142_v58 }
  0xa6   :  { %v74_v1 = vpop.xlane.xlu0 %73  ;;  %v84_v2 = vpop.xlane.xlu1 %83 }
  0xa7   :  { %v126_v3 = vrot.slane %v74_v1, %v125_v42  ;;  %v151_v4 = vrot.slane %v84_v2, %v125_v42 }
  0xa9   :  { %v128_v5 = vsel %vm127_vm3, %v126_v3, %v121_v63  ;;  %v152_v6 = vsel %vm127_vm3, %v151_v4, %v147_v0 }
  0xaa   :  { %v154_v7 = vsel %vm153_vm4, %v152_v6, %v128_v5 }
  0xab   :  { %157 = vst.msk [vmem:[%s218_s2] sm:$0x3] %vm156_vm5, %v154_v7 }

</bundles_post_ra>
